<compile_context>
chip_gen: v7x
topology: tpu7x:2x2x1
jax: 0.10.0
libtpu: 0.0.40
codegen_flags: <defaults>
</compile_context>

<pallas_src>
import jax
import jax.numpy as jnp
from jax import lax
from jax.experimental import pallas as pl
from jax.experimental.pallas import tpu as pltpu


# ---------------------------------------------------------------------------
# Pallas kernel: embedding gather + GRU recurrence + final fully-connected.
# PyTorch nn.GRU gate equations, gate order (r, z, n):
#   r = sigmoid(gi_r + b_ir + gh_r + b_hr)
#   z = sigmoid(gi_z + b_iz + gh_z + b_hz)
#   n = tanh   (gi_n + b_in + r * (gh_n + b_hn))
#   h = (1 - z) * n + z * h
# ---------------------------------------------------------------------------
def gru_fc_kernel(tok_ref,        # (S,)      int32 token ids (SMEM, scalar prefetch)
                  embed_ref,      # (V, 1, E) embedding table (VMEM)
                  wi_ref,         # (E, 3H)   input->gates  [r|z|n]  (= w_ih.T)
                  wh_ref,         # (H, 3H)   hidden->gates [r|z|n]  (= w_hh.T)
                  brz_ref,        # (1, 2H)   (b_ir + b_hr) | (b_iz + b_hz)
                  bin_ref,        # (1, H)    b_in
                  bhn_ref,        # (1, H)    b_hn
                  wfc_ref,        # (H, O)    fc weight (transposed)
                  bfc_ref,        # (1, O)    fc bias
                  out_ref,        # (1, O)
                  emb_scratch):   # (S, E)    VMEM scratch for gathered embeddings
    S, E = emb_scratch.shape
    H = wh_ref.shape[0]

    # --- embedding gather inside the kernel (table is only a few KB) ---------
    for t in range(S):
        emb_scratch[pl.ds(t, 1), :] = embed_ref[tok_ref[t]]           # (1, E)

    # --- hoisted input projections: ONE (S,E)x(E,3H) matmul for all steps ----
    gi = jnp.dot(emb_scratch[...], wi_ref[...],
                 preferred_element_type=jnp.float32)                  # (S, 3H)

    # --- hoist weight / bias loads out of the recurrence ---------------------
    wh = wh_ref[...]
    brz = brz_ref[...]
    b_in = bin_ref[...]
    b_hn = bhn_ref[...]

    # --- fully unrolled GRU recurrence (S static & small) --------------------
    h = jnp.zeros((1, H), jnp.float32)
    for t in range(S):
        gi_t = gi[t:t + 1, :]                                         # (1, 3H)
        gh = jnp.dot(h, wh, preferred_element_type=jnp.float32)       # (1, 3H)
        rz = jax.nn.sigmoid(gi_t[:, :2 * H] + gh[:, :2 * H] + brz)    # (1, 2H)
        r, z = rz[:, :H], rz[:, H:]
        n = jnp.tanh(gi_t[:, 2 * H:] + b_in + r * (gh[:, 2 * H:] + b_hn))
        h = (1.0 - z) * n + z * h

    # --- final fully-connected on the last hidden state ----------------------
    out_ref[...] = (jnp.dot(h, wfc_ref[...],
                            preferred_element_type=jnp.float32)
                    + bfc_ref[...])


# ---------------------------------------------------------------------------
# Parameters (PyTorch-style shapes) and one-time preprocessing.
# ---------------------------------------------------------------------------
def init_params(key, input_dim, embed_dim, hidden_dim, out_dim):
    """Deterministic synthetic parameters with PyTorch-style shapes."""
    ks = jax.random.split(key, 8)
    u = lambda k, shape, s: jax.random.uniform(k, shape, jnp.float32, -s, s)
    s_h = 1.0 / jnp.sqrt(hidden_dim)
    return dict(
        embed_w=jax.random.normal(ks[0], (input_dim, embed_dim), jnp.float32),
        w_ih=u(ks[1], (3 * hidden_dim, embed_dim), s_h),    # [r; z; n] stacked
        w_hh=u(ks[2], (3 * hidden_dim, hidden_dim), s_h),
        b_ih=u(ks[3], (3 * hidden_dim,), s_h),
        b_hh=u(ks[4], (3 * hidden_dim,), s_h),
        w_fc=u(ks[5], (out_dim, hidden_dim), s_h),
        b_fc=u(ks[6], (out_dim,), s_h),
    )


def prepare_params(params, hidden_dim, out_dim):
    """One-time, per-model weight preprocessing (kept off the per-call path)."""
    H = hidden_dim
    V, E = params["embed_w"].shape
    w_ih, w_hh = params["w_ih"], params["w_hh"]
    b_ih, b_hh = params["b_ih"], params["b_hh"]
    return dict(
        embed=params["embed_w"].astype(jnp.float32).reshape(V, 1, E),  # (V,1,E)
        wi_all=w_ih.T.astype(jnp.float32),                             # (E, 3H) [r|z|n]
        wh_all=w_hh.T.astype(jnp.float32),                             # (H, 3H) [r|z|n]
        brz=(b_ih[:2 * H] + b_hh[:2 * H]).reshape(1, 2 * H),           # (1, 2H)
        b_in=b_ih[2 * H:].reshape(1, H),                               # (1, H)
        b_hn=b_hh[2 * H:].reshape(1, H),                               # (1, H)
        wfc=params["w_fc"].T.astype(jnp.float32),                      # (H, O)
        bfc=params["b_fc"].reshape(1, out_dim),                        # (1, O)
    )


# ---------------------------------------------------------------------------
# Forward pass (single fused pallas_call).
# ---------------------------------------------------------------------------
def rnn_forward(x, prep):
    """x: (seq_len, 1) int32 tokens -> (1, out_dim) f32."""
    S = x.shape[0]
    tokens = x[:, 0].astype(jnp.int32)            # (S,)
    E = prep["embed"].shape[2]
    O = prep["wfc"].shape[1]

    vmem = pl.BlockSpec(memory_space=pltpu.MemorySpace.VMEM)
    return pl.pallas_call(
        gru_fc_kernel,
        out_shape=jax.ShapeDtypeStruct((1, O), jnp.float32),
        grid_spec=pltpu.PrefetchScalarGridSpec(
            num_scalar_prefetch=1,                 # token ids -> SMEM
            grid=(),
            in_specs=[vmem] * 8,
            out_specs=vmem,
            scratch_shapes=[pltpu.VMEM((S, E), jnp.float32)],
        ),
    )(tokens, prep["embed"], prep["wi_all"], prep["wh_all"],
      prep["brz"], prep["b_in"], prep["b_hn"], prep["wfc"], prep["bfc"])


# ---------------------------------------------------------------------------
# Pure-JAX reference matching PyTorch nn.GRU semantics (batch=1).
# ---------------------------------------------------------------------------
def rnn_forward_ref(x, params, hidden_dim, out_dim):
    H = hidden_dim
    emb = params["embed_w"][x[:, 0]].astype(jnp.float32)
    w_ih, w_hh = params["w_ih"], params["w_hh"]
    b_ih, b_hh = params["b_ih"], params["b_hh"]

    def step(h, x_t):
        gi = x_t @ w_ih.T + b_ih
        gh = h @ w_hh.T + b_hh
        r = jax.nn.sigmoid(gi[0:H] + gh[0:H])
        z = jax.nn.sigmoid(gi[H:2 * H] + gh[H:2 * H])
        n = jnp.tanh(gi[2 * H:3 * H] + r * gh[2 * H:3 * H])
        return (1.0 - z) * n + z * h, None

    h_final, _ = lax.scan(step, jnp.zeros((H,), jnp.float32), emb)
    out = h_final @ params["w_fc"].T + params["b_fc"]
    return out.reshape(1, out_dim)


if __name__ == "__main__":
    # Small shapes consistent with the module: vocab=50, embed=16, hidden=32,
    # out=4, seq_len=8, batch=1 (forced by `fc(hidden.view(1, -1))`).
    input_dim, embed_dim, hidden_dim, out_dim = 50, 16, 32, 4
    seq_len = 8

    key = jax.random.PRNGKey(0)
    k_tok, k_par = jax.random.split(key)
    params = init_params(k_par, input_dim, embed_dim, hidden_dim, out_dim)
    prep = prepare_params(params, hidden_dim, out_dim)     # one-time prep
    x = jax.random.randint(k_tok, (seq_len, 1), 0, input_dim, dtype=jnp.int32)

    out = jax.block_until_ready(rnn_forward(x, prep))
    ref = jax.block_until_ready(rnn_forward_ref(x, params, hidden_dim, out_dim))

    assert out.shape == (1, out_dim)
    assert jnp.allclose(out, ref, atol=1e-5, rtol=1e-5), (out, ref)
    print("KERNEL_OK")
</pallas_src>

<mosaic_0001>
module attributes {stable_mosaic.version = 11 : i64} {
  func.func @gru_fc_kernel(%arg0: memref<8xi32, #tpu.memory_space<smem>>, %arg1: memref<50x1x16xf32, #tpu.memory_space<vmem>>, %arg2: memref<16x96xf32, #tpu.memory_space<vmem>>, %arg3: memref<32x96xf32, #tpu.memory_space<vmem>>, %arg4: memref<1x64xf32, #tpu.memory_space<vmem>>, %arg5: memref<1x32xf32, #tpu.memory_space<vmem>>, %arg6: memref<1x32xf32, #tpu.memory_space<vmem>>, %arg7: memref<32x4xf32, #tpu.memory_space<vmem>>, %arg8: memref<1x4xf32, #tpu.memory_space<vmem>>, %arg9: memref<1x4xf32, #tpu.memory_space<vmem>>, %arg10: memref<8x16xf32, #tpu.memory_space<vmem>>) attributes {dimension_semantics = [], scalar_prefetch = 1 : i64, scratch_operands = 1 : i64, tpu.core_type = #tpu.core_type<tc>} {
    %c0 = arith.constant 0 : index
    %0 = memref.load %arg0[%c0] : memref<8xi32, #tpu.memory_space<smem>>
    %1 = arith.index_cast %0 : i32 to index
    %c0_0 = arith.constant 0 : index
    %c0_1 = arith.constant 0 : index
    %2 = vector.load %arg1[%1, %c0_0, %c0_1] : memref<50x1x16xf32, #tpu.memory_space<vmem>>, vector<1x1x16xf32>
    %3 = vector.shape_cast %2 : vector<1x1x16xf32> to vector<1x16xf32>
    %c0_2 = arith.constant 0 : index
    %c0_3 = arith.constant 0 : index
    %4 = vector.load %arg10[%c0_2, %c0_3] : memref<8x16xf32, #tpu.memory_space<vmem>>, vector<1x16xf32>
    tpu.vector_store %arg10[%c0_2, %c0_3], %3 {strides = array<i32>} : memref<8x16xf32, #tpu.memory_space<vmem>>, vector<1x16xf32>,
    %c1 = arith.constant 1 : index
    %5 = memref.load %arg0[%c1] : memref<8xi32, #tpu.memory_space<smem>>
    %6 = arith.index_cast %5 : i32 to index
    %c0_4 = arith.constant 0 : index
    %c0_5 = arith.constant 0 : index
    %7 = vector.load %arg1[%6, %c0_4, %c0_5] : memref<50x1x16xf32, #tpu.memory_space<vmem>>, vector<1x1x16xf32>
    %8 = vector.shape_cast %7 : vector<1x1x16xf32> to vector<1x16xf32>
    %c1_6 = arith.constant 1 : index
    %c0_7 = arith.constant 0 : index
    %9 = vector.load %arg10[%c1_6, %c0_7] : memref<8x16xf32, #tpu.memory_space<vmem>>, vector<1x16xf32>
    tpu.vector_store %arg10[%c1_6, %c0_7], %8 {strides = array<i32>} : memref<8x16xf32, #tpu.memory_space<vmem>>, vector<1x16xf32>,
    %c2 = arith.constant 2 : index
    %10 = memref.load %arg0[%c2] : memref<8xi32, #tpu.memory_space<smem>>
    %11 = arith.index_cast %10 : i32 to index
    %c0_8 = arith.constant 0 : index
    %c0_9 = arith.constant 0 : index
    %12 = vector.load %arg1[%11, %c0_8, %c0_9] : memref<50x1x16xf32, #tpu.memory_space<vmem>>, vector<1x1x16xf32>
    %13 = vector.shape_cast %12 : vector<1x1x16xf32> to vector<1x16xf32>
    %c2_10 = arith.constant 2 : index
    %c0_11 = arith.constant 0 : index
    %14 = vector.load %arg10[%c2_10, %c0_11] : memref<8x16xf32, #tpu.memory_space<vmem>>, vector<1x16xf32>
    tpu.vector_store %arg10[%c2_10, %c0_11], %13 {strides = array<i32>} : memref<8x16xf32, #tpu.memory_space<vmem>>, vector<1x16xf32>,
    %c3 = arith.constant 3 : index
    %15 = memref.load %arg0[%c3] : memref<8xi32, #tpu.memory_space<smem>>
    %16 = arith.index_cast %15 : i32 to index
    %c0_12 = arith.constant 0 : index
    %c0_13 = arith.constant 0 : index
    %17 = vector.load %arg1[%16, %c0_12, %c0_13] : memref<50x1x16xf32, #tpu.memory_space<vmem>>, vector<1x1x16xf32>
    %18 = vector.shape_cast %17 : vector<1x1x16xf32> to vector<1x16xf32>
    %c3_14 = arith.constant 3 : index
    %c0_15 = arith.constant 0 : index
    %19 = vector.load %arg10[%c3_14, %c0_15] : memref<8x16xf32, #tpu.memory_space<vmem>>, vector<1x16xf32>
    tpu.vector_store %arg10[%c3_14, %c0_15], %18 {strides = array<i32>} : memref<8x16xf32, #tpu.memory_space<vmem>>, vector<1x16xf32>,
    %c4 = arith.constant 4 : index
    %20 = memref.load %arg0[%c4] : memref<8xi32, #tpu.memory_space<smem>>
    %21 = arith.index_cast %20 : i32 to index
    %c0_16 = arith.constant 0 : index
    %c0_17 = arith.constant 0 : index
    %22 = vector.load %arg1[%21, %c0_16, %c0_17] : memref<50x1x16xf32, #tpu.memory_space<vmem>>, vector<1x1x16xf32>
    %23 = vector.shape_cast %22 : vector<1x1x16xf32> to vector<1x16xf32>
    %c4_18 = arith.constant 4 : index
    %c0_19 = arith.constant 0 : index
    %24 = vector.load %arg10[%c4_18, %c0_19] : memref<8x16xf32, #tpu.memory_space<vmem>>, vector<1x16xf32>
    tpu.vector_store %arg10[%c4_18, %c0_19], %23 {strides = array<i32>} : memref<8x16xf32, #tpu.memory_space<vmem>>, vector<1x16xf32>,
    %c5 = arith.constant 5 : index
    %25 = memref.load %arg0[%c5] : memref<8xi32, #tpu.memory_space<smem>>
    %26 = arith.index_cast %25 : i32 to index
    %c0_20 = arith.constant 0 : index
    %c0_21 = arith.constant 0 : index
    %27 = vector.load %arg1[%26, %c0_20, %c0_21] : memref<50x1x16xf32, #tpu.memory_space<vmem>>, vector<1x1x16xf32>
    %28 = vector.shape_cast %27 : vector<1x1x16xf32> to vector<1x16xf32>
    %c5_22 = arith.constant 5 : index
    %c0_23 = arith.constant 0 : index
    %29 = vector.load %arg10[%c5_22, %c0_23] : memref<8x16xf32, #tpu.memory_space<vmem>>, vector<1x16xf32>
    tpu.vector_store %arg10[%c5_22, %c0_23], %28 {strides = array<i32>} : memref<8x16xf32, #tpu.memory_space<vmem>>, vector<1x16xf32>,
    %c6 = arith.constant 6 : index
    %30 = memref.load %arg0[%c6] : memref<8xi32, #tpu.memory_space<smem>>
    %31 = arith.index_cast %30 : i32 to index
    %c0_24 = arith.constant 0 : index
    %c0_25 = arith.constant 0 : index
    %32 = vector.load %arg1[%31, %c0_24, %c0_25] : memref<50x1x16xf32, #tpu.memory_space<vmem>>, vector<1x1x16xf32>
    %33 = vector.shape_cast %32 : vector<1x1x16xf32> to vector<1x16xf32>
    %c6_26 = arith.constant 6 : index
    %c0_27 = arith.constant 0 : index
    %34 = vector.load %arg10[%c6_26, %c0_27] : memref<8x16xf32, #tpu.memory_space<vmem>>, vector<1x16xf32>
    tpu.vector_store %arg10[%c6_26, %c0_27], %33 {strides = array<i32>} : memref<8x16xf32, #tpu.memory_space<vmem>>, vector<1x16xf32>,
    %c7 = arith.constant 7 : index
    %35 = memref.load %arg0[%c7] : memref<8xi32, #tpu.memory_space<smem>>
    %36 = arith.index_cast %35 : i32 to index
    %c0_28 = arith.constant 0 : index
    %c0_29 = arith.constant 0 : index
    %37 = vector.load %arg1[%36, %c0_28, %c0_29] : memref<50x1x16xf32, #tpu.memory_space<vmem>>, vector<1x1x16xf32>
    %38 = vector.shape_cast %37 : vector<1x1x16xf32> to vector<1x16xf32>
    %c7_30 = arith.constant 7 : index
    %c0_31 = arith.constant 0 : index
    %39 = vector.load %arg10[%c7_30, %c0_31] : memref<8x16xf32, #tpu.memory_space<vmem>>, vector<1x16xf32>
    tpu.vector_store %arg10[%c7_30, %c0_31], %38 {strides = array<i32>} : memref<8x16xf32, #tpu.memory_space<vmem>>, vector<1x16xf32>,
    %c0_32 = arith.constant 0 : index
    %c0_33 = arith.constant 0 : index
    %40 = vector.load %arg10[%c0_32, %c0_33] : memref<8x16xf32, #tpu.memory_space<vmem>>, vector<8x16xf32>
    %c0_34 = arith.constant 0 : index
    %c0_35 = arith.constant 0 : index
    %41 = vector.load %arg2[%c0_34, %c0_35] : memref<16x96xf32, #tpu.memory_space<vmem>>, vector<16x96xf32>
    %cst = arith.constant dense<0.000000e+00> : vector<8x96xf32>
    %42 = tpu.matmul %40, %41, %cst {dimension_numbers = #tpu.dot_dimension_numbers<[1], [0], [0], [1], [0, 0, 1, 1], [], []>} : vector<8x16xf32>, vector<16x96xf32>, vector<8x96xf32> -> vector<8x96xf32>
    %c0_36 = arith.constant 0 : index
    %c0_37 = arith.constant 0 : index
    %43 = vector.load %arg3[%c0_36, %c0_37] : memref<32x96xf32, #tpu.memory_space<vmem>>, vector<32x96xf32>
    %c0_38 = arith.constant 0 : index
    %c0_39 = arith.constant 0 : index
    %44 = vector.load %arg4[%c0_38, %c0_39] : memref<1x64xf32, #tpu.memory_space<vmem>>, vector<1x64xf32>
    %c0_40 = arith.constant 0 : index
    %c0_41 = arith.constant 0 : index
    %45 = vector.load %arg5[%c0_40, %c0_41] : memref<1x32xf32, #tpu.memory_space<vmem>>, vector<1x32xf32>
    %c0_42 = arith.constant 0 : index
    %c0_43 = arith.constant 0 : index
    %46 = vector.load %arg6[%c0_42, %c0_43] : memref<1x32xf32, #tpu.memory_space<vmem>>, vector<1x32xf32>
    %cst_44 = arith.constant 0.000000e+00 : f32
    %47 = vector.broadcast %cst_44 : f32 to vector<1x32xf32>
    %48 = vector.extract_strided_slice %42 {offsets = [0, 0], sizes = [1, 96], strides = [1, 1]} : vector<8x96xf32> to vector<1x96xf32>
    %cst_45 = arith.constant dense<0.000000e+00> : vector<1x96xf32>
    %49 = tpu.matmul %47, %43, %cst_45 {dimension_numbers = #tpu.dot_dimension_numbers<[1], [0], [0], [1], [0, 0, 1, 1], [], []>} : vector<1x32xf32>, vector<32x96xf32>, vector<1x96xf32> -> vector<1x96xf32>
    %50 = vector.extract_strided_slice %48 {offsets = [0, 0], sizes = [1, 64], strides = [1, 1]} : vector<1x96xf32> to vector<1x64xf32>
    %51 = vector.extract_strided_slice %49 {offsets = [0, 0], sizes = [1, 64], strides = [1, 1]} : vector<1x96xf32> to vector<1x64xf32>
    %52 = arith.addf %50, %51 : vector<1x64xf32>
    %53 = arith.addf %52, %44 : vector<1x64xf32>
    %54 = arith.negf %53 : vector<1x64xf32>
    %55 = math.exp %54 : vector<1x64xf32>
    %cst_46 = arith.constant 1.000000e+00 : f32
    %56 = vector.broadcast %cst_46 : f32 to vector<1x64xf32>
    %57 = arith.addf %56, %55 : vector<1x64xf32>
    %58 = arith.divf %56, %57 : vector<1x64xf32>
    %59 = vector.extract_strided_slice %58 {offsets = [0, 0], sizes = [1, 32], strides = [1, 1]} : vector<1x64xf32> to vector<1x32xf32>
    %60 = vector.extract_strided_slice %58 {offsets = [0, 32], sizes = [1, 32], strides = [1, 1]} : vector<1x64xf32> to vector<1x32xf32>
    %61 = vector.extract_strided_slice %48 {offsets = [0, 64], sizes = [1, 32], strides = [1, 1]} : vector<1x96xf32> to vector<1x32xf32>
    %62 = arith.addf %61, %45 : vector<1x32xf32>
    %63 = vector.extract_strided_slice %49 {offsets = [0, 64], sizes = [1, 32], strides = [1, 1]} : vector<1x96xf32> to vector<1x32xf32>
    %64 = arith.addf %63, %46 : vector<1x32xf32>
    %65 = arith.mulf %59, %64 : vector<1x32xf32>
    %66 = arith.addf %62, %65 : vector<1x32xf32>
    %67 = math.tanh %66 : vector<1x32xf32>
    %cst_47 = arith.constant 1.000000e+00 : f32
    %68 = vector.broadcast %cst_47 : f32 to vector<1x32xf32>
    %69 = arith.subf %68, %60 : vector<1x32xf32>
    %70 = arith.mulf %69, %67 : vector<1x32xf32>
    %71 = arith.mulf %60, %47 : vector<1x32xf32>
    %72 = arith.addf %70, %71 : vector<1x32xf32>
    %73 = vector.extract_strided_slice %42 {offsets = [1, 0], sizes = [1, 96], strides = [1, 1]} : vector<8x96xf32> to vector<1x96xf32>
    %cst_48 = arith.constant dense<0.000000e+00> : vector<1x96xf32>
    %74 = tpu.matmul %72, %43, %cst_48 {dimension_numbers = #tpu.dot_dimension_numbers<[1], [0], [0], [1], [0, 0, 1, 1], [], []>} : vector<1x32xf32>, vector<32x96xf32>, vector<1x96xf32> -> vector<1x96xf32>
    %75 = vector.extract_strided_slice %73 {offsets = [0, 0], sizes = [1, 64], strides = [1, 1]} : vector<1x96xf32> to vector<1x64xf32>
    %76 = vector.extract_strided_slice %74 {offsets = [0, 0], sizes = [1, 64], strides = [1, 1]} : vector<1x96xf32> to vector<1x64xf32>
    %77 = arith.addf %75, %76 : vector<1x64xf32>
    %78 = arith.addf %77, %44 : vector<1x64xf32>
    %79 = arith.negf %78 : vector<1x64xf32>
    %80 = math.exp %79 : vector<1x64xf32>
    %cst_49 = arith.constant 1.000000e+00 : f32
    %81 = vector.broadcast %cst_49 : f32 to vector<1x64xf32>
    %82 = arith.addf %81, %80 : vector<1x64xf32>
    %83 = arith.divf %81, %82 : vector<1x64xf32>
    %84 = vector.extract_strided_slice %83 {offsets = [0, 0], sizes = [1, 32], strides = [1, 1]} : vector<1x64xf32> to vector<1x32xf32>
    %85 = vector.extract_strided_slice %83 {offsets = [0, 32], sizes = [1, 32], strides = [1, 1]} : vector<1x64xf32> to vector<1x32xf32>
    %86 = vector.extract_strided_slice %73 {offsets = [0, 64], sizes = [1, 32], strides = [1, 1]} : vector<1x96xf32> to vector<1x32xf32>
    %87 = arith.addf %86, %45 : vector<1x32xf32>
    %88 = vector.extract_strided_slice %74 {offsets = [0, 64], sizes = [1, 32], strides = [1, 1]} : vector<1x96xf32> to vector<1x32xf32>
    %89 = arith.addf %88, %46 : vector<1x32xf32>
    %90 = arith.mulf %84, %89 : vector<1x32xf32>
    %91 = arith.addf %87, %90 : vector<1x32xf32>
    %92 = math.tanh %91 : vector<1x32xf32>
    %cst_50 = arith.constant 1.000000e+00 : f32
    %93 = vector.broadcast %cst_50 : f32 to vector<1x32xf32>
    %94 = arith.subf %93, %85 : vector<1x32xf32>
    %95 = arith.mulf %94, %92 : vector<1x32xf32>
    %96 = arith.mulf %85, %72 : vector<1x32xf32>
    %97 = arith.addf %95, %96 : vector<1x32xf32>
    %98 = vector.extract_strided_slice %42 {offsets = [2, 0], sizes = [1, 96], strides = [1, 1]} : vector<8x96xf32> to vector<1x96xf32>
    %cst_51 = arith.constant dense<0.000000e+00> : vector<1x96xf32>
    %99 = tpu.matmul %97, %43, %cst_51 {dimension_numbers = #tpu.dot_dimension_numbers<[1], [0], [0], [1], [0, 0, 1, 1], [], []>} : vector<1x32xf32>, vector<32x96xf32>, vector<1x96xf32> -> vector<1x96xf32>
    %100 = vector.extract_strided_slice %98 {offsets = [0, 0], sizes = [1, 64], strides = [1, 1]} : vector<1x96xf32> to vector<1x64xf32>
    %101 = vector.extract_strided_slice %99 {offsets = [0, 0], sizes = [1, 64], strides = [1, 1]} : vector<1x96xf32> to vector<1x64xf32>
    %102 = arith.addf %100, %101 : vector<1x64xf32>
    %103 = arith.addf %102, %44 : vector<1x64xf32>
    %104 = arith.negf %103 : vector<1x64xf32>
    %105 = math.exp %104 : vector<1x64xf32>
    %cst_52 = arith.constant 1.000000e+00 : f32
    %106 = vector.broadcast %cst_52 : f32 to vector<1x64xf32>
    %107 = arith.addf %106, %105 : vector<1x64xf32>
    %108 = arith.divf %106, %107 : vector<1x64xf32>
    %109 = vector.extract_strided_slice %108 {offsets = [0, 0], sizes = [1, 32], strides = [1, 1]} : vector<1x64xf32> to vector<1x32xf32>
    %110 = vector.extract_strided_slice %108 {offsets = [0, 32], sizes = [1, 32], strides = [1, 1]} : vector<1x64xf32> to vector<1x32xf32>
    %111 = vector.extract_strided_slice %98 {offsets = [0, 64], sizes = [1, 32], strides = [1, 1]} : vector<1x96xf32> to vector<1x32xf32>
    %112 = arith.addf %111, %45 : vector<1x32xf32>
    %113 = vector.extract_strided_slice %99 {offsets = [0, 64], sizes = [1, 32], strides = [1, 1]} : vector<1x96xf32> to vector<1x32xf32>
    %114 = arith.addf %113, %46 : vector<1x32xf32>
    %115 = arith.mulf %109, %114 : vector<1x32xf32>
    %116 = arith.addf %112, %115 : vector<1x32xf32>
    %117 = math.tanh %116 : vector<1x32xf32>
    %cst_53 = arith.constant 1.000000e+00 : f32
    %118 = vector.broadcast %cst_53 : f32 to vector<1x32xf32>
    %119 = arith.subf %118, %110 : vector<1x32xf32>
    %120 = arith.mulf %119, %117 : vector<1x32xf32>
    %121 = arith.mulf %110, %97 : vector<1x32xf32>
    %122 = arith.addf %120, %121 : vector<1x32xf32>
    %123 = vector.extract_strided_slice %42 {offsets = [3, 0], sizes = [1, 96], strides = [1, 1]} : vector<8x96xf32> to vector<1x96xf32>
    %cst_54 = arith.constant dense<0.000000e+00> : vector<1x96xf32>
    %124 = tpu.matmul %122, %43, %cst_54 {dimension_numbers = #tpu.dot_dimension_numbers<[1], [0], [0], [1], [0, 0, 1, 1], [], []>} : vector<1x32xf32>, vector<32x96xf32>, vector<1x96xf32> -> vector<1x96xf32>
    %125 = vector.extract_strided_slice %123 {offsets = [0, 0], sizes = [1, 64], strides = [1, 1]} : vector<1x96xf32> to vector<1x64xf32>
    %126 = vector.extract_strided_slice %124 {offsets = [0, 0], sizes = [1, 64], strides = [1, 1]} : vector<1x96xf32> to vector<1x64xf32>
    %127 = arith.addf %125, %126 : vector<1x64xf32>
    %128 = arith.addf %127, %44 : vector<1x64xf32>
    %129 = arith.negf %128 : vector<1x64xf32>
    %130 = math.exp %129 : vector<1x64xf32>
    %cst_55 = arith.constant 1.000000e+00 : f32
    %131 = vector.broadcast %cst_55 : f32 to vector<1x64xf32>
    %132 = arith.addf %131, %130 : vector<1x64xf32>
    %133 = arith.divf %131, %132 : vector<1x64xf32>
    %134 = vector.extract_strided_slice %133 {offsets = [0, 0], sizes = [1, 32], strides = [1, 1]} : vector<1x64xf32> to vector<1x32xf32>
    %135 = vector.extract_strided_slice %133 {offsets = [0, 32], sizes = [1, 32], strides = [1, 1]} : vector<1x64xf32> to vector<1x32xf32>
    %136 = vector.extract_strided_slice %123 {offsets = [0, 64], sizes = [1, 32], strides = [1, 1]} : vector<1x96xf32> to vector<1x32xf32>
    %137 = arith.addf %136, %45 : vector<1x32xf32>
    %138 = vector.extract_strided_slice %124 {offsets = [0, 64], sizes = [1, 32], strides = [1, 1]} : vector<1x96xf32> to vector<1x32xf32>
    %139 = arith.addf %138, %46 : vector<1x32xf32>
    %140 = arith.mulf %134, %139 : vector<1x32xf32>
    %141 = arith.addf %137, %140 : vector<1x32xf32>
    %142 = math.tanh %141 : vector<1x32xf32>
    %cst_56 = arith.constant 1.000000e+00 : f32
    %143 = vector.broadcast %cst_56 : f32 to vector<1x32xf32>
    %144 = arith.subf %143, %135 : vector<1x32xf32>
    %145 = arith.mulf %144, %142 : vector<1x32xf32>
    %146 = arith.mulf %135, %122 : vector<1x32xf32>
    %147 = arith.addf %145, %146 : vector<1x32xf32>
    %148 = vector.extract_strided_slice %42 {offsets = [4, 0], sizes = [1, 96], strides = [1, 1]} : vector<8x96xf32> to vector<1x96xf32>
    %cst_57 = arith.constant dense<0.000000e+00> : vector<1x96xf32>
    %149 = tpu.matmul %147, %43, %cst_57 {dimension_numbers = #tpu.dot_dimension_numbers<[1], [0], [0], [1], [0, 0, 1, 1], [], []>} : vector<1x32xf32>, vector<32x96xf32>, vector<1x96xf32> -> vector<1x96xf32>
    %150 = vector.extract_strided_slice %148 {offsets = [0, 0], sizes = [1, 64], strides = [1, 1]} : vector<1x96xf32> to vector<1x64xf32>
    %151 = vector.extract_strided_slice %149 {offsets = [0, 0], sizes = [1, 64], strides = [1, 1]} : vector<1x96xf32> to vector<1x64xf32>
    %152 = arith.addf %150, %151 : vector<1x64xf32>
    %153 = arith.addf %152, %44 : vector<1x64xf32>
    %154 = arith.negf %153 : vector<1x64xf32>
    %155 = math.exp %154 : vector<1x64xf32>
    %cst_58 = arith.constant 1.000000e+00 : f32
    %156 = vector.broadcast %cst_58 : f32 to vector<1x64xf32>
    %157 = arith.addf %156, %155 : vector<1x64xf32>
    %158 = arith.divf %156, %157 : vector<1x64xf32>
    %159 = vector.extract_strided_slice %158 {offsets = [0, 0], sizes = [1, 32], strides = [1, 1]} : vector<1x64xf32> to vector<1x32xf32>
    %160 = vector.extract_strided_slice %158 {offsets = [0, 32], sizes = [1, 32], strides = [1, 1]} : vector<1x64xf32> to vector<1x32xf32>
    %161 = vector.extract_strided_slice %148 {offsets = [0, 64], sizes = [1, 32], strides = [1, 1]} : vector<1x96xf32> to vector<1x32xf32>
    %162 = arith.addf %161, %45 : vector<1x32xf32>
    %163 = vector.extract_strided_slice %149 {offsets = [0, 64], sizes = [1, 32], strides = [1, 1]} : vector<1x96xf32> to vector<1x32xf32>
    %164 = arith.addf %163, %46 : vector<1x32xf32>
    %165 = arith.mulf %159, %164 : vector<1x32xf32>
    %166 = arith.addf %162, %165 : vector<1x32xf32>
    %167 = math.tanh %166 : vector<1x32xf32>
    %cst_59 = arith.constant 1.000000e+00 : f32
    %168 = vector.broadcast %cst_59 : f32 to vector<1x32xf32>
    %169 = arith.subf %168, %160 : vector<1x32xf32>
    %170 = arith.mulf %169, %167 : vector<1x32xf32>
    %171 = arith.mulf %160, %147 : vector<1x32xf32>
    %172 = arith.addf %170, %171 : vector<1x32xf32>
    %173 = vector.extract_strided_slice %42 {offsets = [5, 0], sizes = [1, 96], strides = [1, 1]} : vector<8x96xf32> to vector<1x96xf32>
    %cst_60 = arith.constant dense<0.000000e+00> : vector<1x96xf32>
    %174 = tpu.matmul %172, %43, %cst_60 {dimension_numbers = #tpu.dot_dimension_numbers<[1], [0], [0], [1], [0, 0, 1, 1], [], []>} : vector<1x32xf32>, vector<32x96xf32>, vector<1x96xf32> -> vector<1x96xf32>
    %175 = vector.extract_strided_slice %173 {offsets = [0, 0], sizes = [1, 64], strides = [1, 1]} : vector<1x96xf32> to vector<1x64xf32>
    %176 = vector.extract_strided_slice %174 {offsets = [0, 0], sizes = [1, 64], strides = [1, 1]} : vector<1x96xf32> to vector<1x64xf32>
    %177 = arith.addf %175, %176 : vector<1x64xf32>
    %178 = arith.addf %177, %44 : vector<1x64xf32>
    %179 = arith.negf %178 : vector<1x64xf32>
    %180 = math.exp %179 : vector<1x64xf32>
    %cst_61 = arith.constant 1.000000e+00 : f32
    %181 = vector.broadcast %cst_61 : f32 to vector<1x64xf32>
    %182 = arith.addf %181, %180 : vector<1x64xf32>
    %183 = arith.divf %181, %182 : vector<1x64xf32>
    %184 = vector.extract_strided_slice %183 {offsets = [0, 0], sizes = [1, 32], strides = [1, 1]} : vector<1x64xf32> to vector<1x32xf32>
    %185 = vector.extract_strided_slice %183 {offsets = [0, 32], sizes = [1, 32], strides = [1, 1]} : vector<1x64xf32> to vector<1x32xf32>
    %186 = vector.extract_strided_slice %173 {offsets = [0, 64], sizes = [1, 32], strides = [1, 1]} : vector<1x96xf32> to vector<1x32xf32>
    %187 = arith.addf %186, %45 : vector<1x32xf32>
    %188 = vector.extract_strided_slice %174 {offsets = [0, 64], sizes = [1, 32], strides = [1, 1]} : vector<1x96xf32> to vector<1x32xf32>
    %189 = arith.addf %188, %46 : vector<1x32xf32>
    %190 = arith.mulf %184, %189 : vector<1x32xf32>
    %191 = arith.addf %187, %190 : vector<1x32xf32>
    %192 = math.tanh %191 : vector<1x32xf32>
    %cst_62 = arith.constant 1.000000e+00 : f32
    %193 = vector.broadcast %cst_62 : f32 to vector<1x32xf32>
    %194 = arith.subf %193, %185 : vector<1x32xf32>
    %195 = arith.mulf %194, %192 : vector<1x32xf32>
    %196 = arith.mulf %185, %172 : vector<1x32xf32>
    %197 = arith.addf %195, %196 : vector<1x32xf32>
    %198 = vector.extract_strided_slice %42 {offsets = [6, 0], sizes = [1, 96], strides = [1, 1]} : vector<8x96xf32> to vector<1x96xf32>
    %cst_63 = arith.constant dense<0.000000e+00> : vector<1x96xf32>
    %199 = tpu.matmul %197, %43, %cst_63 {dimension_numbers = #tpu.dot_dimension_numbers<[1], [0], [0], [1], [0, 0, 1, 1], [], []>} : vector<1x32xf32>, vector<32x96xf32>, vector<1x96xf32> -> vector<1x96xf32>
    %200 = vector.extract_strided_slice %198 {offsets = [0, 0], sizes = [1, 64], strides = [1, 1]} : vector<1x96xf32> to vector<1x64xf32>
    %201 = vector.extract_strided_slice %199 {offsets = [0, 0], sizes = [1, 64], strides = [1, 1]} : vector<1x96xf32> to vector<1x64xf32>
    %202 = arith.addf %200, %201 : vector<1x64xf32>
    %203 = arith.addf %202, %44 : vector<1x64xf32>
    %204 = arith.negf %203 : vector<1x64xf32>
    %205 = math.exp %204 : vector<1x64xf32>
    %cst_64 = arith.constant 1.000000e+00 : f32
    %206 = vector.broadcast %cst_64 : f32 to vector<1x64xf32>
    %207 = arith.addf %206, %205 : vector<1x64xf32>
    %208 = arith.divf %206, %207 : vector<1x64xf32>
    %209 = vector.extract_strided_slice %208 {offsets = [0, 0], sizes = [1, 32], strides = [1, 1]} : vector<1x64xf32> to vector<1x32xf32>
    %210 = vector.extract_strided_slice %208 {offsets = [0, 32], sizes = [1, 32], strides = [1, 1]} : vector<1x64xf32> to vector<1x32xf32>
    %211 = vector.extract_strided_slice %198 {offsets = [0, 64], sizes = [1, 32], strides = [1, 1]} : vector<1x96xf32> to vector<1x32xf32>
    %212 = arith.addf %211, %45 : vector<1x32xf32>
    %213 = vector.extract_strided_slice %199 {offsets = [0, 64], sizes = [1, 32], strides = [1, 1]} : vector<1x96xf32> to vector<1x32xf32>
    %214 = arith.addf %213, %46 : vector<1x32xf32>
    %215 = arith.mulf %209, %214 : vector<1x32xf32>
    %216 = arith.addf %212, %215 : vector<1x32xf32>
    %217 = math.tanh %216 : vector<1x32xf32>
    %cst_65 = arith.constant 1.000000e+00 : f32
    %218 = vector.broadcast %cst_65 : f32 to vector<1x32xf32>
    %219 = arith.subf %218, %210 : vector<1x32xf32>
    %220 = arith.mulf %219, %217 : vector<1x32xf32>
    %221 = arith.mulf %210, %197 : vector<1x32xf32>
    %222 = arith.addf %220, %221 : vector<1x32xf32>
    %223 = vector.extract_strided_slice %42 {offsets = [7, 0], sizes = [1, 96], strides = [1, 1]} : vector<8x96xf32> to vector<1x96xf32>
    %cst_66 = arith.constant dense<0.000000e+00> : vector<1x96xf32>
    %224 = tpu.matmul %222, %43, %cst_66 {dimension_numbers = #tpu.dot_dimension_numbers<[1], [0], [0], [1], [0, 0, 1, 1], [], []>} : vector<1x32xf32>, vector<32x96xf32>, vector<1x96xf32> -> vector<1x96xf32>
    %225 = vector.extract_strided_slice %223 {offsets = [0, 0], sizes = [1, 64], strides = [1, 1]} : vector<1x96xf32> to vector<1x64xf32>
    %226 = vector.extract_strided_slice %224 {offsets = [0, 0], sizes = [1, 64], strides = [1, 1]} : vector<1x96xf32> to vector<1x64xf32>
    %227 = arith.addf %225, %226 : vector<1x64xf32>
    %228 = arith.addf %227, %44 : vector<1x64xf32>
    %229 = arith.negf %228 : vector<1x64xf32>
    %230 = math.exp %229 : vector<1x64xf32>
    %cst_67 = arith.constant 1.000000e+00 : f32
    %231 = vector.broadcast %cst_67 : f32 to vector<1x64xf32>
    %232 = arith.addf %231, %230 : vector<1x64xf32>
    %233 = arith.divf %231, %232 : vector<1x64xf32>
    %234 = vector.extract_strided_slice %233 {offsets = [0, 0], sizes = [1, 32], strides = [1, 1]} : vector<1x64xf32> to vector<1x32xf32>
    %235 = vector.extract_strided_slice %233 {offsets = [0, 32], sizes = [1, 32], strides = [1, 1]} : vector<1x64xf32> to vector<1x32xf32>
    %236 = vector.extract_strided_slice %223 {offsets = [0, 64], sizes = [1, 32], strides = [1, 1]} : vector<1x96xf32> to vector<1x32xf32>
    %237 = arith.addf %236, %45 : vector<1x32xf32>
    %238 = vector.extract_strided_slice %224 {offsets = [0, 64], sizes = [1, 32], strides = [1, 1]} : vector<1x96xf32> to vector<1x32xf32>
    %239 = arith.addf %238, %46 : vector<1x32xf32>
    %240 = arith.mulf %234, %239 : vector<1x32xf32>
    %241 = arith.addf %237, %240 : vector<1x32xf32>
    %242 = math.tanh %241 : vector<1x32xf32>
    %cst_68 = arith.constant 1.000000e+00 : f32
    %243 = vector.broadcast %cst_68 : f32 to vector<1x32xf32>
    %244 = arith.subf %243, %235 : vector<1x32xf32>
    %245 = arith.mulf %244, %242 : vector<1x32xf32>
    %246 = arith.mulf %235, %222 : vector<1x32xf32>
    %247 = arith.addf %245, %246 : vector<1x32xf32>
    %c0_69 = arith.constant 0 : index
    %c0_70 = arith.constant 0 : index
    %248 = vector.load %arg7[%c0_69, %c0_70] : memref<32x4xf32, #tpu.memory_space<vmem>>, vector<32x4xf32>
    %cst_71 = arith.constant dense<0.000000e+00> : vector<1x4xf32>
    %249 = tpu.matmul %247, %248, %cst_71 {dimension_numbers = #tpu.dot_dimension_numbers<[1], [0], [0], [1], [0, 0, 1, 1], [], []>} : vector<1x32xf32>, vector<32x4xf32>, vector<1x4xf32> -> vector<1x4xf32>
    %c0_72 = arith.constant 0 : index
    %c0_73 = arith.constant 0 : index
    %250 = vector.load %arg8[%c0_72, %c0_73] : memref<1x4xf32, #tpu.memory_space<vmem>>, vector<1x4xf32>
    %251 = arith.addf %249, %250 : vector<1x4xf32>
    %c0_74 = arith.constant 0 : index
    %c0_75 = arith.constant 0 : index
    %252 = vector.load %arg9[%c0_74, %c0_75] : memref<1x4xf32, #tpu.memory_space<vmem>>, vector<1x4xf32>
    tpu.vector_store %arg9[%c0_74, %c0_75], %251 {strides = array<i32>} : memref<1x4xf32, #tpu.memory_space<vmem>>, vector<1x4xf32>,
    return
  }
}

</mosaic_0001>

<bundles_post_ra>
// kernel: tpu_custom_call.1
= control target key start
LH: loop header
LB: loop body
LE: loop exit
PB: predicated region body
PF: predicated region fallthrough
CT: control target
= control target key end

     0   :  { %s1786_s0 = inlined_call_operand.vmem [shape: s32[8], index: 0, kind: input, shape index: {}]   ;;  %s1787_s1 = inlined_call_operand.vmem [shape: f32[50,1,16], index: 1, kind: input, shape index: {}]   ;;  %s1788_s2 = inlined_call_operand.vmem [shape: f32[16,96], index: 2, kind: input, shape index: {}]   ;;  %s1789_s3 = inlined_call_operand.vmem [shape: f32[32,96], index: 3, kind: input, shape index: {}]   ;;  %s1790_s4 = inlined_call_operand.vmem [shape: f32[1,64], index: 4, kind: input, shape index: {}]   ;;  %s1791_s5 = inlined_call_operand.vmem [shape: f32[1,32], index: 5, kind: input, shape index: {}]   ;;  %s1792_s6 = inlined_call_operand.vmem [shape: f32[1,32], index: 6, kind: input, shape index: {}]   ;;  %s1793_s7 = inlined_call_operand.vmem [shape: f32[32,4], index: 7, kind: input, shape index: {}]   ;;  %s1794_s8 = inlined_call_operand.vmem [shape: f32[1,4], index: 8, kind: input, shape index: {}]   ;;  %s1795_s9 = inlined_call_operand.hbm [shape: f32[1,4], index: 9, kind: output, shape index: {}]  }
   0x1   :  { %s14_s11 = sshll.u32 %s1786_s0, 4  ;;  %s15_s11 = int_to_ptr.vmem [resolvable:$true] %s14_s11 }
   0x2   :  { %s1445_s12 = scalar_lea.vmem %s15_s11, 16  ;;  %p1450_p1 = scmp.lt.s32.totalorder %s15_s11, %s15_s11 }
   0x3   :  { %p1446_p0 = scmp.ne.s32.totalorder %s15_s11, %s1445_s12  ;;  %p1451_p2 = scmp.lt.s32.totalorder %s1445_s12, %s1445_s12 }
   0x5   :  { %p1452_p3 = por %p1451_p2, %p1450_p1 }
   0x7   :  { %p1453_p4 = pnand %p1452_p3, %p1446_p0 }
   0x9   :  { %1456 = shalt.err (!%p1453_p4)  }
   0xa   :  { %s1483_s13 = smov [#allocation4]  }
   0xb   :  { %17 = dma.vmem_to_smem %s15_s11, 16, %s1483_s13, [#allocation3] }
   0xc   :  { %1479 = dma.done.wait [#allocation3], 16 }
   0xd   :  { %1480 = vsyncadd [#allocation3], 4294967280 }
   0xe   :  { %19 = sfence }
   0xf   :  { %v147_v0 = vld [vmem:[%s1789_s3] sm:$0xff]  ;;  %v148_v1 = vld [vmem:[%s1789_s3 + $0x8] sm:$0xff]  ;;  %v149_v2 = vld [vmem:[%s1789_s3 + $0x10] sm:$0xff]  ;;  %v1484_v3 = vmov 0.0|0.0   ;;  %vm1485_vm0 = vmmov 0   ;;  %v1486_v6 = vmov 0.0  }
  0x10   :  { %1336 = vmatprep.subr.bf16.mxu1 %v1484_v3  ;;  %v1553_v4 = vpack.c.bf16 %v148_v1, %v147_v0  ;;  %v150_v5 = vld [vmem:[%s1789_s3 + $0x18] sm:$0xff]  ;;  %1242 = vmatprep.mubr.msk.f32.mxu1 %vm1485_vm0, %v1486_v6  ;;  %v71_v7 = vld [vmem:[%s1788_s2] sm:$0xff]  ;;  %v72_v8 = vld [vmem:[%s1788_s2 + $0x8] sm:$0xff]  ;;  %s37_s25 = sld [smem:[#allocation4]]  ;;  %s1153_s3 = sld [smem:[#allocation4 + $0x1]] }
  0x11   :  { %1333 = vmatprep.subr.bf16.mxu0 %v1484_v3  ;;  %v1334_v9 = vpack.c.bf16 %v72_v8, %v71_v7  ;;  %1231 = vmatprep.mubr.msk.f32.mxu0 %vm1485_vm0, %v1486_v6  ;;  %s1154_s26 = sld [smem:[#allocation4 + $0x2]]  ;;  %v1570_v10 = vpack.c.bf16 %v150_v5, %v149_v2  ;;  %s1572_s27 = sld [smem:[#allocation4 + $0x3]]  ;;  %v1163_v11 = vld [vmem:[%s1792_s6] ss:$0 sm:$0xff] }
  0x12   :  { %1338 = vmatpush3.bf16.msra.mxu1 %v1553_v4  ;;  %s1574_s28 = sld [smem:[#allocation4 + $0x4]]  ;;  %s1580_s2 = sld [smem:[#allocation4 + $0x5]]  ;;  %v1162_v12 = vld [vmem:[%s1791_s5] ss:$0 sm:$0xff] }
  0x13   :  { %1339 = vmatprep.subr.bf16.mxu1 %v1484_v3  ;;  %1335 = vmatpush3.bf16.msra.mxu0 %v1334_v9  ;;  %s1582_s10 = sld [smem:[#allocation4 + $0x6]]  ;;  %s1587_s13 = sld [smem:[#allocation4 + $0x7]] }
  0x14   :  { %1342 = vmatprep.subr.bf16.mxu0 %v1484_v3 }
  0x15   :  { %20 = vsyncpa [#allocation6], 0  ;;  %vm40_vm1 = vcmask 122880   ;;  %s1487_s6 = smov 64   ;;  %vm73_vm2 = vcmask 130048   ;;  %vm154_vm3 = vcmask 261120   ;;  %v353_v54 = vlaneseq }
  0x16   :  { %250 = vrot.lane.b32.xlu0 %v1163_v11, %s1487_s6  ;;  %241 = vrot.lane.b32.xlu1 %v1162_v12, %s1487_s6  ;;  %s38_s5 = scalar_lea.vmem %s1787_s1, %s37_s25  ;;  %s43_s0 = scalar_lea.vmem %s1787_s1, %s1153_s3  ;;  %v151_v29 = vld [vmem:[%s1790_s4] sm:$0x1]  ;;  %vm1129_vm4 = vcmask 24576  }
  0x17   :  { %1341 = vmatpush3.bf16.msra.mxu1 %v1570_v10  ;;  %v39_v13 = vld [vmem:[%s38_s5] sm:$0x1]  ;;  %s47_s20 = scalar_lea.vmem %s1787_s1, %s1154_s26  ;;  %s51_s23 = scalar_lea.vmem %s1787_s1, %s1572_s27  ;;  %v354_v55 = vshrl.u32 %v353_v54, 7 }
  0x18   :  { %1348 = vmatprep.subr.bf16.mxu1 %v1484_v3  ;;  %41 = vst.msk [vmem:[#allocation2] sm:$0x1] %vm40_vm1, %v39_v13  ;;  %v44_v14 = vld [vmem:[%s43_s0] sm:$0x1]  ;;  %s55_s29 = scalar_lea.vmem %s1787_s1, %s1574_s28  ;;  %s59_s30 = scalar_lea.vmem %s1787_s1, %s1580_s2 }
  0x19   :  { %v48_v15 = vld [vmem:[%s47_s20] sm:$0x1]  ;;  %45 = vst.msk [vmem:[#allocation2 + $0x1] sm:$0x1] %vm40_vm1, %v44_v14  ;;  %s63_s27 = scalar_lea.vmem %s1787_s1, %s1582_s10  ;;  %s67_s15 = scalar_lea.vmem %s1787_s1, %s1587_s13  ;;  %v355_v56 = vsub.s32 0, %v354_v55 }
  0x1a   :  { %1243 = vmatmul.mubr.f32.vlgmr.msra.gmra.mrb[0].mxu1 %v1486_v6  ;;  %49 = vst.msk [vmem:[#allocation2 + $0x2] sm:$0x1] %vm40_vm1, %v48_v15  ;;  %v52_v16 = vld [vmem:[%s51_s23] sm:$0x1]  ;;  %s1488_s4 = smov 96   ;;  %s1489_s20 = smov [#allocation5]  }
  0x1b   :  { %v56_v17 = vld [vmem:[%s55_s29] sm:$0x1]  ;;  %53 = vst.msk [vmem:[#allocation2 + $0x3] sm:$0x1] %vm40_vm1, %v52_v16  ;;  %1350 = vmatpush3.bf16.msra.mxu1 %v1553_v4  ;;  %1264 = vmatprep.mubr.msk.f32.mxu1 %vm1485_vm0, %v1486_v6  ;;  %v1671_v57 = vrot.slane %v151_v29, %v355_v56  ;;  %s1137_s21 = sshll.u32 %s1489_s20, 4  ;;  %s1138_s21 = int_to_ptr.vmem [resolvable:$true] %s1137_s21 }
  0x1c   :  { %57 = vst.msk [vmem:[#allocation2 + $0x4] sm:$0x1] %vm40_vm1, %v56_v17  ;;  %v60_v18 = vld [vmem:[%s59_s30] sm:$0x1]  ;;  %1351 = vmatprep.subr.bf16.mxu1 %v1484_v3  ;;  %s1457_s22 = scalar_lea.vmem %s1138_s21, 16  ;;  %s1461_s23 = scalar_lea.vmem %s1138_s21, 32 }
  0x1d   :  { %v64_v19 = vld [vmem:[%s63_s27] sm:$0x1]  ;;  %61 = vst.msk [vmem:[#allocation2 + $0x5] sm:$0x1] %vm40_vm1, %v60_v18  ;;  %p1458_p5 = scmp.ne.s32.totalorder %s1138_s21, %s1457_s22  ;;  %p1462_p6 = scmp.lt.s32.totalorder %s1138_s21, %s1138_s21 }
  0x1e   :  { %65 = vst.msk [vmem:[#allocation2 + $0x6] sm:$0x1] %vm40_vm1, %v64_v19  ;;  %v68_v20 = vld [vmem:[%s67_s15] sm:$0x1]  ;;  %p1463_p7 = scmp.lt.s32.totalorder %s1461_s23, %s1457_s22 }
  0x1f   :  { %69 = vst.msk [vmem:[#allocation2 + $0x7] sm:$0x1] %vm40_vm1, %v68_v20  ;;  %1353 = vmatpush3.bf16.msra.mxu1 %v1570_v10 }
  0x20   :  { %1360 = vmatprep.subr.bf16.mxu1 %v1484_v3  ;;  %p1464_p8 = por %p1463_p7, %p1462_p6 }
  0x22   :  { %p1465_p9 = pnand %p1464_p8, %p1458_p5 }
  0x26   :  { %v70_v21 = vld [vmem:[#allocation2] sm:$0xff] }
  0x27   :  { %1232 = vmatmul.mubr.msk.f32.vlgmr.msra.gmra.mrb[0].mxu0 %vm73_vm2, %v70_v21 }
  0x28   :  { %1344 = vmatpush3.bf16.msra.mxu0 %v1553_v4  ;;  %1253 = vmatprep.mubr.msk.f32.mxu0 %vm1485_vm0, %v1486_v6 }
  0x29   :  { %1345 = vmatprep.subr.bf16.mxu0 %v1484_v3 }
  0x2c   :  { %1347 = vmatpush3.bf16.msra.mxu0 %v1570_v10 }
  0x2d   :  { %1354 = vmatprep.subr.bf16.mxu0 %v1484_v3 }
  0x88   :  { %v1644_v22 = vpop.permute.xlu0 %250  ;;  %v242_v37 = vpop.permute.xlu1 %241 }
  0xed   :  { %v224_v23 = vpop.f32.mrb[0].mxu1 }
  0xee   :  { %v253_v24 = vadd.f32 %v1644_v22, %v224_v23  ;;  %v1244_v25 = vpop.f32.mrb[1].mxu1 }
  0xf0   :  { %255 = vrot.lane.b32.xlu0 %v253_v24, %s1487_s6 }
  0xfa   :  { %v1648_v26 = vpop.f32.mrb[0].mxu0 }
  0xfb   :  { %v228_v27 = vadd.f32 %v224_v23, %v1648_v26  ;;  %v1233_v28 = vpop.f32.mrb[1].mxu0  ;;  %v1656_v38 = vadd.f32 %v242_v37, %v1648_v26 }
  0xfd   :  { %v229_v30 = vadd.f32 %v228_v27, %v151_v29 }
  0xff   :  { %v1161_v31 = vmul.f32 -1.442695, %v229_v30 }
 0x101   :  { %1397 = vpow2.f32 %v1161_v31 }
 0x10b   :  { %v1398_v32 = vpop.eup %1397 }
 0x10c   :  { %v233_v33 = vadd.f32 1.0, %v1398_v32 }
 0x10e   :  { %1399 = vrcp.f32 %v233_v33 }
 0x118   :  { %v1400_v34 = vpop.eup %1399 }
 0x119   :  { %v265_v42 = vsub.f32 1.0, %v1400_v34  ;;  %v271_v44 = vmul.f32 0.0, %v1400_v34 }
 0x162   :  { %v256_v35 = vpop.permute.xlu0 %255 }
 0x163   :  { %v258_v36 = vmul.f32 %v1400_v34, %v256_v35 }
 0x165   :  { %260 = vrot.lane.b32.xlu1 %v258_v36, %s1487_s6 }
 0x1d7   :  { %v261_v39 = vpop.permute.xlu1 %260 }
 0x1d8   :  { %v263_v40 = vadd.f32 %v261_v39, %v1656_v38 }
 0x1da   :  { %1401 = vtanh.f32 %v263_v40 }
 0x1e4   :  { %v1402_v41 = vpop.eup %1401 }
 0x1e5   :  { %267 = vrot.lane.b32.xlu0 %v1402_v41, %s1488_s4 }
 0x257   :  { %v268_v43 = vpop.permute.xlu0 %267 }
 0x258   :  { %v270_v45 = vmul.f32 %v268_v43, %v265_v42 }
 0x25a   :  { %v272_v46 = vadd.f32 %v271_v44, %v270_v45 }
 0x25c   :  { %274 = vrot.lane.b32.xlu1 %v272_v46, %s1488_s4  ;;  %v384_v7 = vrot.slane %v272_v46, 7 }
 0x2ce   :  { %v275_v47 = vpop.permute.xlu1 %274 }
 0x2cf   :  { %1254 = vmatmul.mubr.msk.f32.vlgmr.msra.gmra.mrb[2].mxu0 %vm154_vm3, %v275_v47 }
 0x2d0   :  { %1356 = vmatpush3.bf16.msra.mxu0 %v1553_v4  ;;  %1275 = vmatprep.mubr.msk.f32.mxu0 %vm1485_vm0, %v1486_v6 }
 0x2d1   :  { %1357 = vmatprep.subr.bf16.mxu0 %v1484_v3 }
 0x2d4   :  { %1359 = vmatpush3.bf16.msra.mxu0 %v1570_v10 }
 0x2d5   :  { %1366 = vmatprep.subr.bf16.mxu0 %v1484_v3 }
 0x3a2   :  { %v344_v48 = vpop.f32.mrb[2].mxu0 }
 0x3a3   :  { %v349_v49 = vrot.slane %v344_v48, 7  ;;  %v365_v50 = vadd.f32 %v344_v48, %v1644_v22  ;;  %v1255_v51 = vpop.f32.mrb[3].mxu0 }
 0x3a5   :  { %v351_v52 = vadd.f32 %v349_v49, %v1648_v26  ;;  %v367_v53 = vrot.slane %v365_v50, 7 }
 0x3a7   :  { %368 = vrot.lane.b32.xlu0 %v367_v53, %s1487_s6  ;;  %v358_v58 = vadd.f32 %v1671_v57, %v351_v52 }
 0x3a9   :  { %v1165_v59 = vmul.f32 -1.442695, %v358_v58 }
 0x3ab   :  { %1403 = vpow2.f32 %v1165_v59 }
 0x3b5   :  { %v1404_v60 = vpop.eup %1403 }
 0x3b6   :  { %v362_v61 = vadd.f32 1.0, %v1404_v60 }
 0x3b8   :  { %1405 = vrcp.f32 %v362_v61 }
 0x3c2   :  { %v1406_v62 = vpop.eup %1405 }
 0x3c3   :  { %v378_v8 = vsub.f32 1.0, %v1406_v62  ;;  %v386_v11 = vmul.f32 %v1406_v62, %v384_v7 }
 0x419   :  { %v369_v63 = vpop.permute.xlu0 %368 }
 0x41a   :  { %v371_v0 = vmul.f32 %v1406_v62, %v369_v63 }
 0x41c   :  { %373 = vrot.lane.b32.xlu1 %v371_v0, %s1487_s6 }
 0x48e   :  { %v374_v1 = vpop.permute.xlu1 %373 }
 0x48f   :  { %v376_v2 = vadd.f32 %v374_v1, %v1656_v38 }
 0x491   :  { %1407 = vtanh.f32 %v376_v2 }
 0x49b   :  { %v1408_v5 = vpop.eup %1407 }
 0x49c   :  { %380 = vrot.lane.b32.xlu0 %v1408_v5, %s1488_s4 }
 0x50e   :  { %v381_v9 = vpop.permute.xlu0 %380 }
 0x50f   :  { %v383_v12 = vmul.f32 %v381_v9, %v378_v8 }
 0x511   :  { %v387_v13 = vadd.f32 %v386_v11, %v383_v12 }
 0x513   :  { %v389_v14 = vrot.slane %v387_v13, 1  ;;  %v494_v34 = vrot.slane %v387_v13, 7 }
 0x515   :  { %390 = vrot.lane.b32.xlu1 %v389_v14, %s1488_s4 }
 0x587   :  { %v391_v15 = vpop.permute.xlu1 %390 }
 0x588   :  { %1265 = vmatmul.mubr.msk.f32.vlgmr.msra.gmra.mrb[2].mxu1 %vm154_vm3, %v391_v15 }
 0x589   :  { %1362 = vmatpush3.bf16.msra.mxu1 %v1553_v4  ;;  %1286 = vmatprep.mubr.msk.f32.mxu1 %vm1485_vm0, %v1486_v6 }
 0x58a   :  { %1363 = vmatprep.subr.bf16.mxu1 %v1484_v3 }
 0x58d   :  { %1365 = vmatpush3.bf16.msra.mxu1 %v1570_v10 }
 0x58e   :  { %1372 = vmatprep.subr.bf16.mxu1 %v1484_v3 }
 0x65b   :  { %v460_v16 = vpop.f32.mrb[2].mxu1 }
 0x65c   :  { %v465_v17 = vrot.slane %v460_v16, 6  ;;  %v475_v18 = vadd.f32 %v460_v16, %v1644_v22  ;;  %v1266_v19 = vpop.f32.mrb[3].mxu1 }
 0x65e   :  { %v467_v20 = vadd.f32 %v465_v17, %v1648_v26  ;;  %v477_v21 = vrot.slane %v475_v18, 6 }
 0x660   :  { %478 = vrot.lane.b32.xlu0 %v477_v21, %s1487_s6  ;;  %v468_v23 = vadd.f32 %v467_v20, %v1671_v57 }
 0x662   :  { %v1167_v24 = vmul.f32 -1.442695, %v468_v23 }
 0x664   :  { %1409 = vpow2.f32 %v1167_v24 }
 0x66e   :  { %v1410_v25 = vpop.eup %1409 }
 0x66f   :  { %v472_v27 = vadd.f32 1.0, %v1410_v25 }
 0x671   :  { %1411 = vrcp.f32 %v472_v27 }
 0x67b   :  { %v1412_v28 = vpop.eup %1411 }
 0x67c   :  { %v488_v35 = vsub.f32 1.0, %v1412_v28  ;;  %v496_v37 = vmul.f32 %v1412_v28, %v494_v34 }
 0x6d2   :  { %v479_v29 = vpop.permute.xlu0 %478 }
 0x6d3   :  { %v481_v30 = vmul.f32 %v1412_v28, %v479_v29 }
 0x6d5   :  { %483 = vrot.lane.b32.xlu1 %v481_v30, %s1487_s6 }
 0x747   :  { %v484_v31 = vpop.permute.xlu1 %483 }
 0x748   :  { %v486_v32 = vadd.f32 %v484_v31, %v1656_v38 }
 0x74a   :  { %1413 = vtanh.f32 %v486_v32 }
 0x754   :  { %v1414_v33 = vpop.eup %1413 }
 0x755   :  { %490 = vrot.lane.b32.xlu0 %v1414_v33, %s1488_s4 }
 0x7c7   :  { %v491_v36 = vpop.permute.xlu0 %490 }
 0x7c8   :  { %v493_v39 = vmul.f32 %v491_v36, %v488_v35 }
 0x7ca   :  { %v497_v40 = vadd.f32 %v496_v37, %v493_v39 }
 0x7cc   :  { %v499_v41 = vrot.slane %v497_v40, 2  ;;  %v604_v60 = vrot.slane %v497_v40, 7 }
 0x7ce   :  { %500 = vrot.lane.b32.xlu1 %v499_v41, %s1488_s4 }
 0x840   :  { %v501_v42 = vpop.permute.xlu1 %500 }
 0x841   :  { %1276 = vmatmul.mubr.msk.f32.vlgmr.msra.gmra.mrb[4].mxu0 %vm154_vm3, %v501_v42 }
 0x842   :  { %1368 = vmatpush3.bf16.msra.mxu0 %v1553_v4  ;;  %1297 = vmatprep.mubr.msk.f32.mxu0 %vm1485_vm0, %v1486_v6 }
 0x843   :  { %1369 = vmatprep.subr.bf16.mxu0 %v1484_v3 }
 0x846   :  { %1371 = vmatpush3.bf16.msra.mxu0 %v1570_v10 }
 0x847   :  { %1378 = vmatprep.subr.bf16.mxu0 %v1484_v3 }
 0x914   :  { %v570_v43 = vpop.f32.mrb[4].mxu0 }
 0x915   :  { %v575_v44 = vrot.slane %v570_v43, 5  ;;  %v585_v45 = vadd.f32 %v570_v43, %v1644_v22  ;;  %v1277_v46 = vpop.f32.mrb[5].mxu0 }
 0x917   :  { %v577_v47 = vadd.f32 %v575_v44, %v1648_v26  ;;  %v587_v48 = vrot.slane %v585_v45, 5 }
 0x919   :  { %588 = vrot.lane.b32.xlu0 %v587_v48, %s1487_s6  ;;  %v578_v49 = vadd.f32 %v577_v47, %v1671_v57 }
 0x91b   :  { %v1169_v50 = vmul.f32 -1.442695, %v578_v49 }
 0x91d   :  { %1415 = vpow2.f32 %v1169_v50 }
 0x927   :  { %v1416_v51 = vpop.eup %1415 }
 0x928   :  { %v582_v52 = vadd.f32 1.0, %v1416_v51 }
 0x92a   :  { %1417 = vrcp.f32 %v582_v52 }
 0x934   :  { %v1418_v53 = vpop.eup %1417 }
 0x935   :  { %v598_v61 = vsub.f32 1.0, %v1418_v53  ;;  %v606_v63 = vmul.f32 %v1418_v53, %v604_v60 }
 0x98b   :  { %v589_v54 = vpop.permute.xlu0 %588 }
 0x98c   :  { %v591_v55 = vmul.f32 %v1418_v53, %v589_v54 }
 0x98e   :  { %593 = vrot.lane.b32.xlu1 %v591_v55, %s1487_s6 }
 0xa00   :  { %v594_v56 = vpop.permute.xlu1 %593 }
 0xa01   :  { %v596_v58 = vadd.f32 %v594_v56, %v1656_v38 }
 0xa03   :  { %1419 = vtanh.f32 %v596_v58 }
 0xa0d   :  { %v1420_v59 = vpop.eup %1419 }
 0xa0e   :  { %600 = vrot.lane.b32.xlu0 %v1420_v59, %s1488_s4 }
 0xa80   :  { %v601_v62 = vpop.permute.xlu0 %600 }
 0xa81   :  { %v603_v0 = vmul.f32 %v601_v62, %v598_v61 }
 0xa83   :  { %v607_v1 = vadd.f32 %v606_v63, %v603_v0 }
 0xa85   :  { %v609_v2 = vrot.slane %v607_v1, 3  ;;  %v714_v25 = vrot.slane %v607_v1, 7 }
 0xa87   :  { %610 = vrot.lane.b32.xlu1 %v609_v2, %s1488_s4 }
 0xaf9   :  { %v611_v5 = vpop.permute.xlu1 %610 }
 0xafa   :  { %1287 = vmatmul.mubr.msk.f32.vlgmr.msra.gmra.mrb[4].mxu1 %vm154_vm3, %v611_v5 }
 0xafb   :  { %1374 = vmatpush3.bf16.msra.mxu1 %v1553_v4  ;;  %1308 = vmatprep.mubr.msk.f32.mxu1 %vm1485_vm0, %v1486_v6 }
 0xafc   :  { %1375 = vmatprep.subr.bf16.mxu1 %v1484_v3 }
 0xaff   :  { %1377 = vmatpush3.bf16.msra.mxu1 %v1570_v10 }
 0xb00   :  { %1384 = vmatprep.subr.bf16.mxu1 %v1484_v3 }
 0xbcd   :  { %v680_v7 = vpop.f32.mrb[4].mxu1 }
 0xbce   :  { %v685_v8 = vrot.slane %v680_v7, 4  ;;  %v695_v9 = vadd.f32 %v680_v7, %v1644_v22  ;;  %v1288_v11 = vpop.f32.mrb[5].mxu1 }
 0xbd0   :  { %v687_v12 = vadd.f32 %v685_v8, %v1648_v26  ;;  %v697_v13 = vrot.slane %v695_v9, 4 }
 0xbd2   :  { %698 = vrot.lane.b32.xlu0 %v697_v13, %s1487_s6  ;;  %v688_v14 = vadd.f32 %v687_v12, %v1671_v57 }
 0xbd4   :  { %v1171_v15 = vmul.f32 -1.442695, %v688_v14 }
 0xbd6   :  { %1421 = vpow2.f32 %v1171_v15 }
 0xbe0   :  { %v1422_v16 = vpop.eup %1421 }
 0xbe1   :  { %v692_v17 = vadd.f32 1.0, %v1422_v16 }
 0xbe3   :  { %1423 = vrcp.f32 %v692_v17 }
 0xbed   :  { %v1424_v18 = vpop.eup %1423 }
 0xbee   :  { %v708_v27 = vsub.f32 1.0, %v1424_v18  ;;  %v716_v29 = vmul.f32 %v1424_v18, %v714_v25 }
 0xc44   :  { %v699_v19 = vpop.permute.xlu0 %698 }
 0xc45   :  { %v701_v20 = vmul.f32 %v1424_v18, %v699_v19 }
 0xc47   :  { %703 = vrot.lane.b32.xlu1 %v701_v20, %s1487_s6 }
 0xcb9   :  { %v704_v21 = vpop.permute.xlu1 %703 }
 0xcba   :  { %v706_v23 = vadd.f32 %v704_v21, %v1656_v38 }
 0xcbc   :  { %1425 = vtanh.f32 %v706_v23 }
 0xcc6   :  { %v1426_v24 = vpop.eup %1425 }
 0xcc7   :  { %710 = vrot.lane.b32.xlu0 %v1426_v24, %s1488_s4 }
 0xd39   :  { %v711_v28 = vpop.permute.xlu0 %710 }
 0xd3a   :  { %v713_v30 = vmul.f32 %v711_v28, %v708_v27 }
 0xd3c   :  { %v717_v31 = vadd.f32 %v716_v29, %v713_v30 }
 0xd3e   :  { %v719_v32 = vrot.slane %v717_v31, 4  ;;  %v824_v49 = vrot.slane %v717_v31, 7 }
 0xd40   :  { %720 = vrot.lane.b32.xlu1 %v719_v32, %s1488_s4 }
 0xdb2   :  { %v721_v33 = vpop.permute.xlu1 %720 }
 0xdb3   :  { %1298 = vmatmul.mubr.msk.f32.vlgmr.msra.gmra.mrb[6].mxu0 %vm154_vm3, %v721_v33 }
 0xdb4   :  { %1380 = vmatpush3.bf16.msra.mxu0 %v1553_v4  ;;  %1319 = vmatprep.mubr.msk.f32.mxu0 %vm1485_vm0, %v1486_v6 }
 0xdb5   :  { %1381 = vmatprep.subr.bf16.mxu0 %v1484_v3 }
 0xdb8   :  { %1383 = vmatpush3.bf16.msra.mxu0 %v1570_v10 }
 0xe86   :  { %v790_v34 = vpop.f32.mrb[6].mxu0 }
 0xe87   :  { %v795_v35 = vrot.slane %v790_v34, 3  ;;  %v805_v36 = vadd.f32 %v790_v34, %v1644_v22  ;;  %v1299_v37 = vpop.f32.mrb[7].mxu0 }
 0xe88   :  { %v1050_v37 = vld [vmem:[%s1793_s7 + $0x10] sm:$0xff] }
 0xe89   :  { %v797_v39 = vadd.f32 %v795_v35, %v1648_v26  ;;  %v807_v40 = vrot.slane %v805_v36, 3 }
 0xe8b   :  { %808 = vrot.lane.b32.xlu0 %v807_v40, %s1487_s6  ;;  %v798_v41 = vadd.f32 %v797_v39, %v1671_v57  ;;  %v1051_v40 = vld [vmem:[%s1793_s7 + $0x18] sm:$0xff] }
 0xe8d   :  { %v1173_v4 = vmul.f32 -1.442695, %v798_v41 }
 0xe8f   :  { %1427 = vpow2.f32 %v1173_v4 }
 0xe99   :  { %v1428_v42 = vpop.eup %1427 }
 0xe9a   :  { %v802_v43 = vadd.f32 1.0, %v1428_v42 }
 0xe9c   :  { %1429 = vrcp.f32 %v802_v43 }
 0xea6   :  { %v1430_v44 = vpop.eup %1429 }
 0xea7   :  { %v818_v50 = vsub.f32 1.0, %v1430_v44  ;;  %v826_v52 = vmul.f32 %v1430_v44, %v824_v49 }
 0xefd   :  { %v809_v45 = vpop.permute.xlu0 %808 }
 0xefe   :  { %v811_v10 = vmul.f32 %v1430_v44, %v809_v45 }
 0xf00   :  { %813 = vrot.lane.b32.xlu1 %v811_v10, %s1487_s6 }
 0xf72   :  { %v814_v46 = vpop.permute.xlu1 %813 }
 0xf73   :  { %v816_v47 = vadd.f32 %v814_v46, %v1656_v38 }
 0xf75   :  { %1431 = vtanh.f32 %v816_v47 }
 0xf7f   :  { %v1432_v48 = vpop.eup %1431 }
 0xf80   :  { %820 = vrot.lane.b32.xlu0 %v1432_v48, %s1488_s4 }
 0xff2   :  { %v821_v51 = vpop.permute.xlu0 %820 }
 0xff3   :  { %v823_v53 = vmul.f32 %v821_v51, %v818_v50 }
 0xff5   :  { %v827_v54 = vadd.f32 %v826_v52, %v823_v53 }
 0xff7   :  { %v829_v55 = vrot.slane %v827_v54, 5  ;;  %v934_v13 = vrot.slane %v827_v54, 7 }
 0xff9   :  { %830 = vrot.lane.b32.xlu1 %v829_v55, %s1488_s4 }
0x106b   :  { %v831_v56 = vpop.permute.xlu1 %830 }
0x106c   :  { %1309 = vmatmul.mubr.msk.f32.vlgmr.msra.gmra.mrb[6].mxu1 %vm154_vm3, %v831_v56 }
0x106d   :  { %1330 = vmatprep.mubr.msk.f32.mxu1 %vm1485_vm0, %v1486_v6 }
0x113f   :  { %v900_v58 = vpop.f32.mrb[6].mxu1 }
0x1140   :  { %v905_v59 = vrot.slane %v900_v58, 2  ;;  %v915_v60 = vadd.f32 %v900_v58, %v1644_v22  ;;  %v1310_v61 = vpop.f32.mrb[7].mxu1 }
0x1142   :  { %v907_v62 = vadd.f32 %v905_v59, %v1648_v26  ;;  %v917_v63 = vrot.slane %v915_v60, 2 }
0x1144   :  { %918 = vrot.lane.b32.xlu0 %v917_v63, %s1487_s6  ;;  %v908_v0 = vadd.f32 %v907_v62, %v1671_v57 }
0x1146   :  { %v1175_v1 = vmul.f32 -1.442695, %v908_v0 }
0x1148   :  { %1433 = vpow2.f32 %v1175_v1 }
0x1152   :  { %v1434_v2 = vpop.eup %1433 }
0x1153   :  { %v912_v5 = vadd.f32 1.0, %v1434_v2 }
0x1155   :  { %1435 = vrcp.f32 %v912_v5 }
0x115f   :  { %v1436_v7 = vpop.eup %1435 }
0x1160   :  { %v928_v14 = vsub.f32 1.0, %v1436_v7  ;;  %v936_v16 = vmul.f32 %v1436_v7, %v934_v13 }
0x11b6   :  { %v919_v8 = vpop.permute.xlu0 %918 }
0x11b7   :  { %v921_v6 = vmul.f32 %v1436_v7, %v919_v8 }
0x11b9   :  { %923 = vrot.lane.b32.xlu1 %v921_v6, %s1487_s6 }
0x122b   :  { %v924_v9 = vpop.permute.xlu1 %923 }
0x122c   :  { %v926_v11 = vadd.f32 %v924_v9, %v1656_v38 }
0x122e   :  { %1437 = vtanh.f32 %v926_v11 }
0x1238   :  { %v1438_v12 = vpop.eup %1437 }
0x1239   :  { %930 = vrot.lane.b32.xlu0 %v1438_v12, %s1488_s4 }
0x12ab   :  { %v931_v15 = vpop.permute.xlu0 %930 }
0x12ac   :  { %v933_v17 = vmul.f32 %v931_v15, %v928_v14 }
0x12ae   :  { %v937_v18 = vadd.f32 %v936_v16, %v933_v17 }
0x12b0   :  { %v939_v19 = vrot.slane %v937_v18, 6  ;;  %v1044_v4 = vrot.slane %v937_v18, 7 }
0x12b2   :  { %940 = vrot.lane.b32.xlu1 %v939_v19, %s1488_s4 }
0x1324   :  { %v941_v20 = vpop.permute.xlu1 %940 }
0x1325   :  { %1320 = vmatmul.mubr.msk.f32.vlgmr.msra.gmra.mrb[8].mxu0 %vm154_vm3, %v941_v20 }
0x13f8   :  { %v1010_v21 = vpop.f32.mrb[8].mxu0 }
0x13f9   :  { %v1015_v23 = vrot.slane %v1010_v21, 1  ;;  %v1025_v24 = vadd.f32 %v1010_v21, %v1644_v22  ;;  %v1321_v25 = vpop.f32.mrb[9].mxu0 }
0x13fb   :  { %v1017_v27 = vadd.f32 %v1015_v23, %v1648_v26  ;;  %v1027_v28 = vrot.slane %v1025_v24, 1  ;;  %v1048_v26 = vld [vmem:[%s1793_s7] sm:$0xff] }
0x13fd   :  { %1028 = vrot.lane.b32.xlu0 %v1027_v28, %s1487_s6  ;;  %v1018_v29 = vadd.f32 %v1017_v27, %v1671_v57  ;;  %v1049_v57 = vld [vmem:[%s1793_s7 + $0x8] sm:$0xff] }
0x13fe   :  { %v1385_v39 = vpack.c.bf16 %v1049_v57, %v1048_v26 }
0x13ff   :  { %v1177_v30 = vmul.f32 -1.442695, %v1018_v29 }
0x1400   :  { %1386 = vmatpush3.bf16.msra.mxu1 %v1385_v39 }
0x1401   :  { %1439 = vpow2.f32 %v1177_v30  ;;  %1387 = vmatprep.subr.bf16.mxu1 %v1484_v3  ;;  %v1052_v3 = vld [vmem:[%s1794_s8] sm:$0x1] }
0x140b   :  { %v1440_v31 = vpop.eup %1439 }
0x140c   :  { %v1022_v32 = vadd.f32 1.0, %v1440_v31 }
0x140e   :  { %1441 = vrcp.f32 %v1022_v32 }
0x1418   :  { %v1442_v33 = vpop.eup %1441 }
0x1419   :  { %v1038_v42 = vsub.f32 1.0, %v1442_v33  ;;  %v1046_v44 = vmul.f32 %v1442_v33, %v1044_v4 }
0x146f   :  { %v1029_v34 = vpop.permute.xlu0 %1028 }
0x1470   :  { %v1031_v35 = vmul.f32 %v1442_v33, %v1029_v34 }
0x1472   :  { %1033 = vrot.lane.b32.xlu1 %v1031_v35, %s1487_s6 }
0x14e4   :  { %v1034_v36 = vpop.permute.xlu1 %1033 }
0x14e5   :  { %v1036_v22 = vadd.f32 %v1034_v36, %v1656_v38  ;;  %v1388_v38 = vpack.c.bf16 %v1051_v40, %v1050_v37 }
0x14e7   :  { %1443 = vtanh.f32 %v1036_v22  ;;  %1389 = vmatpush3.bf16.msra.mxu1 %v1388_v38 }
0x14f1   :  { %v1444_v41 = vpop.eup %1443 }
0x14f2   :  { %1040 = vrot.lane.b32.xlu0 %v1444_v41, %s1488_s4 }
0x1564   :  { %v1041_v43 = vpop.permute.xlu0 %1040 }
0x1565   :  { %v1043_v45 = vmul.f32 %v1041_v43, %v1038_v42 }
0x1567   :  { %v1047_v10 = vadd.f32 %v1046_v44, %v1043_v45 }
0x1569   :  { %v1054_v46 = vrot.slane %v1047_v10, 7 }
0x156b   :  { %1055 = vrot.lane.b32.xlu1 %v1054_v46, %s1488_s4 }
0x15dd   :  { %v1056_v47 = vpop.permute.xlu1 %1055 }
0x15de   :  { %1331 = vmatmul.mubr.msk.f32.vlgmr.msra.gmra.mrb[8].mxu1 %vm154_vm3, %v1056_v47 }
0x16b1   :  { %v1125_v48 = vpop.f32.mrb[8].mxu1 }
0x16b2   :  { %v1126_v49 = vadd.f32 %v1125_v48, %v1052_v3  ;;  %v1332_v50 = vpop.f32.mrb[9].mxu1 }
0x16b4   :  { %1130 = vst.msk [vmem:[#allocation5] sm:$0x1] %vm1129_vm4, %v1126_v49 }
0x16b5   :  { %1468 = shalt.err (!%p1465_p9)
}
0x16b6   :  { %s1469_s8 = scalar_lea.hbm %s1795_s9, 16 }
0x16b7   :  { %p1470_p10 = scmp.ne.s32.totalorder %s1795_s9, %s1469_s8  ;;  %p1473_p11 = scmp.lt.u32.totalorder %s1469_s8, %s1795_s9 }
0x16b9   :  { %p1475_p12 = pnand %p1473_p11, %p1470_p10 }
0x16bb   :  { %1478 = shalt.err (!%p1475_p12)
}
0x16bc   :  { %1140 = dma.vmem_to_hbm [thread:$0]  %s1138_s21, 16, %s1795_s9, [#allocation6]  }
0x16bd   :  { %1481 = dma.done.wait [#allocation6], 16  }
0x16be   :  { %1482 = vsyncadd [#allocation6], 4294967280 }
0x16bf   :  { %1144 = vsyncpa [#allocation6], 1 }

</bundles_post_ra>
